<compile_context>
chip_gen: v7x
topology: tpu7x:2x2x1
jax: 0.10.0
libtpu: 0.0.40
codegen_flags: <defaults>
</compile_context>

<pallas_src>
from functools import partial
from math import sqrt

import jax
import jax.numpy as jnp
from jax import lax
from jax.experimental import pallas as pl
from jax.experimental.pallas import tpu as pltpu


def _round_up(x, m):
    return ((x + m - 1) // m) * m


def _num_tensorcores():
    """Best-effort TensorCores-per-chip query (v7x has 2, v5e/v6e have 1)."""
    try:
        dev = jax.devices()[0]
        kind = (getattr(dev, "device_kind", "") or "").lower()
        if "v7" in kind:
            return 2
        return max(1, int(getattr(dev, "num_cores", 1) or 1))
    except Exception:
        return 1


def _vmem_capacity_bytes():
    try:
        info = pltpu.get_tpu_info()
        for attr in ("vmem_capacity_bytes", "vmem_size_bytes", "vmem_bytes"):
            v = getattr(info, attr, None)
            if v:
                return int(v)
    except Exception:
        pass
    return 128 << 20


def rnn_kernel(x_ref, noise_ref, h0_ref, wi_ref, wrecT_ref,
               rates_ref, h_scr, r_scr, drive_scr,
               *, noise_std, alpha, block_t, unroll):
    """Runs `block_t` steps of the leaky low-rank noisy RNN.

    x_ref:     (block_t, block_b, I)  input slab for this time block
    noise_ref: (block_t, block_b, H)  white-noise slab for this time block
    h0_ref:    (1, H)                 initial hidden state         (Buffered(1))
    wi_ref:    (I, H)                 alpha * w_i * s_i[:, None]   (Buffered(1))
    wrecT_ref: (H, H)                 alpha * w_rec.T              (Buffered(1))
    rates_ref: (block_t, block_b, H)  r_t = tanh(h_t) (output, lane-dense H)
    h_scr:     (block_b, H) f32       hidden-state carry (VMEM scratch)
    r_scr:     (block_b, H)           rate carry         (VMEM scratch)
    drive_scr: (block_t, block_b, H)  f32 precomputed per-step drive
    """
    t = pl.program_id(1)                       # time-block index (innermost)

    @pl.when(t == 0)
    def _():
        h0 = jnp.broadcast_to(h0_ref[...].astype(jnp.float32), h_scr.shape)
        h_scr[...] = h0
        r_scr[...] = jnp.tanh(h0).astype(r_scr.dtype)

    one_minus_alpha = float(1.0 - alpha)
    noise_f = float(noise_std)
    w_dtype = wrecT_ref.dtype                  # bf16 weights OK (f32 accum)
    bt, bb, _ = x_ref.shape

    # ---- Hoisted input projection: one MXU-friendly matmul per time block.
    # drive[t] = alpha * (x_t @ wi_full) + noise_std * noise_t   (alpha folded
    # into wi_ref), computed once over the whole (block_t*block_b, I) slab so
    # the tiny-K matmul leaves the strictly serial per-step chain.
    x2 = x_ref[...].reshape(bt * bb, -1).astype(w_dtype)
    ext = jnp.dot(x2, wi_ref[...], preferred_element_type=jnp.float32)
    drive_scr[...] = (ext.reshape(bt, bb, -1)
                      + noise_f * noise_ref[...].astype(jnp.float32))

    def step(i, carry):
        h, r = carry
        rec_in = jnp.dot(r.astype(w_dtype), wrecT_ref[...],
                         preferred_element_type=jnp.float32)
        # h_new = (1-alpha)*h + alpha*(rec + ext) + noise_std*nz, with alpha
        # folded into the weights and ext/noise prehoisted into drive_scr.
        h_new = one_minus_alpha * h + rec_in + drive_scr[i]
        r_new = jnp.tanh(h_new)
        rates_ref[i] = r_new.astype(rates_ref.dtype)   # lane-dense store
        return h_new, r_new.astype(r_scr.dtype)

    h, r = lax.fori_loop(0, block_t, step, (h_scr[...], r_scr[...]),
                         unroll=unroll)
    h_scr[...] = h
    r_scr[...] = r


def lowrank_rnn_forward(x_bti, noise_tbh, params, *, noise_std, alpha,
                        block_t=8, block_b=None,
                        weight_dtype=jnp.float32, rate_dtype=jnp.float32):
    """Pallas forward pass.

    x_bti:     (B, T, I)  batch-major input (PyTorch convention)
    noise_tbh: (T, B, H)  time-major recurrent white noise (f32 or bf16)
    weight_dtype / rate_dtype: jnp.bfloat16 on v6e/v7x for ~2x MXU/EUP
      throughput and half the HBM/VMEM traffic (numerics tradeoff vs. the f32
      reference — keep f32 for bit-level testing).
    """
    B, T, I = x_bti.shape
    H = params["m_rec"].shape[0]

    # ---- Proxy parameters (define_proxy_parameters) with constant folding:
    #   alpha folded into w_rec.T and wi_full; /hidden_size folded into wo_full.
    w_rec = params["m_rec"] @ params["n_rec"].T / H + params["rec_noise"]
    wrecT = (alpha * w_rec.T)
    wi_scaled = (alpha * (params["w_i"] * params["s_i"][:, None]))
    wo_full = (params["w_o"] * params["s_o"][None, :]) / H
    h0 = params["h0"].reshape(1, H).astype(jnp.float32)

    # ---- Pad H to a lane-dense multiple of 128. Zero-padded hidden units get
    # zero drive, zero recurrent input and zero outgoing weights, so they stay
    # exactly 0 and do not perturb the real units.
    H_pad = _round_up(H, 128)
    if H_pad != H:
        wrecT = jnp.pad(wrecT, ((0, H_pad - H), (0, H_pad - H)))
        wi_scaled = jnp.pad(wi_scaled, ((0, 0), (0, H_pad - H)))
        h0 = jnp.pad(h0, ((0, 0), (0, H_pad - H)))
        noise_tbh = jnp.pad(noise_tbh, ((0, 0), (0, 0), (0, H_pad - H)))
    wrecT = wrecT.astype(weight_dtype)
    wi_scaled = wi_scaled.astype(weight_dtype)

    # ---- Batch padding / per-generation block_b selection.
    B_pad0 = _round_up(B, 8)
    if block_b is None:
        n_cores = _num_tensorcores()
        if n_cores > 1 and B_pad0 > 8:
            # v7x: >=2 batch blocks so the "parallel" axis spans both TCs.
            block_b = _round_up(-(-B_pad0 // n_cores), 8)
        else:
            # v5e/v6e (1 TC): single batch block — splitting only adds
            # grid-step overhead and re-runs the t==0 init.
            block_b = B_pad0
    else:
        block_b = _round_up(block_b, 8)
    B_pad = _round_up(B_pad0, block_b)

    # x is tiny (I-wide): one transpose to time-major; noise is already
    # time-major so the big (T,B,H) stream needs no transpose round-trip.
    x_tbi = jnp.transpose(x_bti, (1, 0, 2)).astype(jnp.float32)

    # Pad T so the time grid divides evenly; the recurrence only flows forward,
    # so trailing pad steps cannot affect real outputs (they are sliced off).
    n_tblk = (T + block_t - 1) // block_t
    T_pad = n_tblk * block_t
    x_tbi = jnp.pad(x_tbi, ((0, T_pad - T), (0, B_pad - B), (0, 0)))
    noise_tbh = jnp.pad(noise_tbh, ((0, T_pad - T), (0, B_pad - B), (0, 0)))

    # ---- VMEM budget from the real (lane-padded) block sizes.
    f32b = 4
    wb = jnp.dtype(weight_dtype).itemsize
    rb = jnp.dtype(rate_dtype).itemsize
    nb = jnp.dtype(noise_tbh.dtype).itemsize
    I_vmem = _round_up(I, 128)
    vmem_est = (
        2 * block_t * block_b * I_vmem * f32b          # x      (double-buffered)
        + 2 * block_t * block_b * H_pad * nb           # noise  (double-buffered)
        + 2 * block_t * block_b * H_pad * rb           # rates  (double-buffered)
        + (H_pad * H_pad + _round_up(I, 8) * H_pad) * wb   # invariant weights (x1)
        + 8 * H_pad * f32b                             # h0 (sublane-padded)
        + block_t * block_b * H_pad * f32b             # drive scratch
        + 2 * block_b * H_pad * f32b                   # h / r carries
    )
    vmem_cap = min(_vmem_capacity_bytes() - (8 << 20), 112 << 20)  # ~56 MiB on v7x
    vmem_limit = int(min(max(vmem_est + (4 << 20), 32 << 20), vmem_cap))

    # Strictly serial recurrence: full unroll only for short time blocks.
    unroll = True if block_t <= 8 else 4

    kernel = partial(rnn_kernel, noise_std=float(noise_std),
                     alpha=float(alpha), block_t=block_t, unroll=unroll)

    n_bblk = B_pad // block_b
    cost = pl.CostEstimate(
        flops=int(2 * T_pad * B_pad * H_pad * (H_pad + I)),
        transcendentals=int(T_pad * B_pad * H_pad),
        bytes_accessed=int(T_pad * B_pad * (I * f32b + H_pad * (nb + rb))
                           + n_bblk * (H_pad * H_pad + I * H_pad) * wb))

    rates_tbh = pl.pallas_call(
        kernel,
        out_shape=jax.ShapeDtypeStruct((T_pad, B_pad, H_pad), rate_dtype),
        grid_spec=pltpu.PrefetchScalarGridSpec(
            num_scalar_prefetch=0,
            grid=(n_bblk, n_tblk),                      # (batch blocks, time blocks)
            in_specs=[
                pl.BlockSpec((block_t, block_b, I), lambda b, t: (t, b, 0)),
                pl.BlockSpec((block_t, block_b, H_pad), lambda b, t: (t, b, 0)),
                pl.BlockSpec((1, H_pad), lambda b, t: (0, 0),
                             pipeline_mode=pl.Buffered(1)),   # h0 (invariant)
                pl.BlockSpec((I, H_pad), lambda b, t: (0, 0),
                             pipeline_mode=pl.Buffered(1)),   # alpha*wi_full
                pl.BlockSpec((H_pad, H_pad), lambda b, t: (0, 0),
                             pipeline_mode=pl.Buffered(1)),   # alpha*w_rec.T
            ],
            out_specs=pl.BlockSpec((block_t, block_b, H_pad),
                                   lambda b, t: (t, b, 0)),
            scratch_shapes=[pltpu.VMEM((block_b, H_pad), jnp.float32),   # h carry
                            pltpu.VMEM((block_b, H_pad), rate_dtype),    # r carry
                            pltpu.VMEM((block_t, block_b, H_pad),
                                       jnp.float32)],                    # drive
        ),
        compiler_params=pltpu.CompilerParams(
            dimension_semantics=("parallel", "arbitrary"),  # batch ∥, time seq
            vmem_limit_bytes=vmem_limit),
        cost_estimate=cost,
    )(x_tbi, noise_tbh, h0, wi_scaled, wrecT)

    rates_tbh = rates_tbh[:T, :B, :H].astype(jnp.float32)
    # Single lane-dense MXU matmul in XLA; the batch-major transpose of the
    # tiny O-wide result is fused into the einsum.
    return jnp.einsum("tbh,ho->bto", rates_tbh, wo_full.astype(jnp.float32))


def ref_forward(x, noise_tbh, params, *, noise_std, alpha):
    """Pure-JAX reference mirroring the PyTorch forward loop exactly."""
    B, T, I = x.shape
    H = params["m_rec"].shape[0]
    w_rec = params["m_rec"] @ params["n_rec"].T / H + params["rec_noise"]
    wi_full = params["w_i"] * params["s_i"][:, None]
    wo_full = params["w_o"] * params["s_o"][None, :]
    h = jnp.broadcast_to(params["h0"][None, :], (B, H))
    r = jnp.tanh(h)
    outs = []
    for i in range(T):
        h = h + noise_std * noise_tbh[i] + alpha * (
            -h + r @ w_rec.T + x[:, i, :] @ wi_full)
        r = jnp.tanh(h)
        outs.append(r @ wo_full / H)
    return jnp.stack(outs, axis=1)


def init_params(key, input_size, hidden_size, output_size, rho=1.0, rank=1):
    """Deterministic parameter init matching the module's __init__ shapes."""
    k_wi, k_m, k_n, k_wo, k_rn = jax.random.split(key, 5)
    return {
        "w_i": jax.random.normal(k_wi, (input_size, hidden_size), jnp.float32),
        "s_i": jnp.ones((input_size,), jnp.float32),
        "m_rec": jax.random.normal(k_m, (hidden_size, rank), jnp.float32),
        "n_rec": jax.random.normal(k_n, (hidden_size, rank), jnp.float32),
        "w_o": jax.random.normal(k_wo, (hidden_size, output_size), jnp.float32),
        "s_o": jnp.ones((output_size,), jnp.float32),
        "h0": jnp.zeros((hidden_size,), jnp.float32),
        "rec_noise": (rho / sqrt(hidden_size)) * jax.random.normal(
            k_rn, (hidden_size, hidden_size), jnp.float32),
    }


if __name__ == "__main__":
    B, T, I, H, O = 2, 8, 4, 32, 2
    noise_std, alpha = 0.05, 0.2

    key = jax.random.PRNGKey(0)
    k_params, k_x, k_noise = jax.random.split(key, 3)

    params = init_params(k_params, I, H, O, rho=1.0, rank=1)
    x = jax.random.normal(k_x, (B, T, I), jnp.float32)
    # The module draws fresh recurrent white noise each forward (torch.randn);
    # here it is drawn deterministically, time-major, and fed to both the
    # kernel and the reference so the two outputs are directly comparable.
    noise_tbh = jax.random.normal(k_noise, (T, B, H), jnp.float32)

    out = lowrank_rnn_forward(x, noise_tbh, params,
                              noise_std=noise_std, alpha=alpha, block_t=8)
    out = jax.block_until_ready(out)

    out_ref = ref_forward(x, noise_tbh, params,
                          noise_std=noise_std, alpha=alpha)
    assert out.shape == (B, T, O)
    err = jnp.max(jnp.abs(out - out_ref))
    assert jnp.allclose(out, out_ref, atol=2e-3, rtol=2e-3), \
        f"max abs err {err}"

    print("KERNEL_OK")
</pallas_src>

<mosaic_0001>
module attributes {stable_mosaic.version = 11 : i64} {
  func.func @rnn_kernel(%arg0: i32, %arg1: i32, %arg2: memref<8x8x4xf32, #tpu.memory_space<vmem>>, %arg3: memref<8x8x128xf32, #tpu.memory_space<vmem>>, %arg4: memref<1x128xf32, #tpu.memory_space<vmem>>, %arg5: memref<4x128xf32, #tpu.memory_space<vmem>>, %arg6: memref<128x128xf32, #tpu.memory_space<vmem>>, %arg7: memref<8x8x128xf32, #tpu.memory_space<vmem>>, %arg8: memref<8x128xf32, #tpu.memory_space<vmem>>, %arg9: memref<8x128xf32, #tpu.memory_space<vmem>>, %arg10: memref<8x8x128xf32, #tpu.memory_space<vmem>>) attributes {dimension_semantics = [#tpu.dimension_semantics<parallel>, #tpu.dimension_semantics<arbitrary>], iteration_bounds = array<i64: 1, 1>, scalar_prefetch = 0 : i64, scratch_operands = 3 : i64, tpu.core_type = #tpu.core_type<tc>, window_params = [{transform_indices = @transform_0, window_bounds = array<i64: 8, 8, 4>}, {transform_indices = @transform_1, window_bounds = array<i64: 8, 8, 128>}, {pipeline_mode = #tpu.pipeline_mode<synchronous>, transform_indices = @transform_2, window_bounds = array<i64: 1, 128>}, {pipeline_mode = #tpu.pipeline_mode<synchronous>, transform_indices = @transform_3, window_bounds = array<i64: 4, 128>}, {pipeline_mode = #tpu.pipeline_mode<synchronous>, transform_indices = @transform_4, window_bounds = array<i64: 128, 128>}, {transform_indices = @transform_5, window_bounds = array<i64: 8, 8, 128>}]} {
    %c0_i32 = arith.constant 0 : i32
    %0 = arith.cmpi eq, %arg1, %c0_i32 : i32
    %1 = arith.extui %0 : i1 to i32
    %c0_i32_0 = arith.constant 0 : i32
    %2 = arith.cmpi ne, %1, %c0_i32_0 : i32
    scf.if %2 {
      %c0_85 = arith.constant 0 : index
      %c0_86 = arith.constant 0 : index
      %129 = vector.load %arg4[%c0_85, %c0_86] : memref<1x128xf32, #tpu.memory_space<vmem>>, vector<1x128xf32>
      %130 = vector.shape_cast %129 : vector<1x128xf32> to vector<1x128xf32>
      %131 = vector.broadcast %130 : vector<1x128xf32> to vector<8x128xf32>
      %c0_87 = arith.constant 0 : index
      %c0_88 = arith.constant 0 : index
      %132 = vector.load %arg8[%c0_87, %c0_88] : memref<8x128xf32, #tpu.memory_space<vmem>>, vector<8x128xf32>
      tpu.vector_store %arg8[%c0_87, %c0_88], %131 {strides = array<i32>} : memref<8x128xf32, #tpu.memory_space<vmem>>, vector<8x128xf32>,
      %133 = math.tanh %131 : vector<8x128xf32>
      %c0_89 = arith.constant 0 : index
      %c0_90 = arith.constant 0 : index
      %134 = vector.load %arg9[%c0_89, %c0_90] : memref<8x128xf32, #tpu.memory_space<vmem>>, vector<8x128xf32>
      tpu.vector_store %arg9[%c0_89, %c0_90], %133 {strides = array<i32>} : memref<8x128xf32, #tpu.memory_space<vmem>>, vector<8x128xf32>,
    } else {
    }
    %c0 = arith.constant 0 : index
    %c0_1 = arith.constant 0 : index
    %c0_2 = arith.constant 0 : index
    %3 = vector.load %arg2[%c0, %c0_1, %c0_2] : memref<8x8x4xf32, #tpu.memory_space<vmem>>, vector<8x8x4xf32>
    %4 = vector.shape_cast %3 : vector<8x8x4xf32> to vector<64x4xf32>
    %c0_3 = arith.constant 0 : index
    %c0_4 = arith.constant 0 : index
    %5 = vector.load %arg5[%c0_3, %c0_4] : memref<4x128xf32, #tpu.memory_space<vmem>>, vector<4x128xf32>
    %cst = arith.constant dense<0.000000e+00> : vector<64x128xf32>
    %6 = tpu.matmul %4, %5, %cst {dimension_numbers = #tpu.dot_dimension_numbers<[1], [0], [0], [1], [0, 0, 1, 1], [], []>} : vector<64x4xf32>, vector<4x128xf32>, vector<64x128xf32> -> vector<64x128xf32>
    %7 = vector.shape_cast %6 : vector<64x128xf32> to vector<8x8x128xf32>
    %c0_5 = arith.constant 0 : index
    %c0_6 = arith.constant 0 : index
    %c0_7 = arith.constant 0 : index
    %8 = vector.load %arg3[%c0_5, %c0_6, %c0_7] : memref<8x8x128xf32, #tpu.memory_space<vmem>>, vector<8x8x128xf32>
    %cst_8 = arith.constant 5.000000e-02 : f32
    %9 = vector.broadcast %cst_8 : f32 to vector<8x8x128xf32>
    %10 = arith.mulf %9, %8 : vector<8x8x128xf32>
    %11 = arith.addf %7, %10 : vector<8x8x128xf32>
    %c0_9 = arith.constant 0 : index
    %c0_10 = arith.constant 0 : index
    %c0_11 = arith.constant 0 : index
    %12 = vector.load %arg10[%c0_9, %c0_10, %c0_11] : memref<8x8x128xf32, #tpu.memory_space<vmem>>, vector<8x8x128xf32>
    tpu.vector_store %arg10[%c0_9, %c0_10, %c0_11], %11 {strides = array<i32>} : memref<8x8x128xf32, #tpu.memory_space<vmem>>, vector<8x8x128xf32>,
    %c0_12 = arith.constant 0 : index
    %c0_13 = arith.constant 0 : index
    %13 = vector.load %arg8[%c0_12, %c0_13] : memref<8x128xf32, #tpu.memory_space<vmem>>, vector<8x128xf32>
    %c0_14 = arith.constant 0 : index
    %c0_15 = arith.constant 0 : index
    %14 = vector.load %arg9[%c0_14, %c0_15] : memref<8x128xf32, #tpu.memory_space<vmem>>, vector<8x128xf32>
    %c0_i32_16 = arith.constant 0 : i32
    %c0_17 = arith.constant 0 : index
    %c0_18 = arith.constant 0 : index
    %15 = vector.load %arg6[%c0_17, %c0_18] : memref<128x128xf32, #tpu.memory_space<vmem>>, vector<128x128xf32>
    %cst_19 = arith.constant dense<0.000000e+00> : vector<8x128xf32>
    %16 = tpu.matmul %14, %15, %cst_19 {dimension_numbers = #tpu.dot_dimension_numbers<[1], [0], [0], [1], [0, 0, 1, 1], [], []>} : vector<8x128xf32>, vector<128x128xf32>, vector<8x128xf32> -> vector<8x128xf32>
    %cst_20 = arith.constant 8.000000e-01 : f32
    %17 = vector.broadcast %cst_20 : f32 to vector<8x128xf32>
    %18 = arith.mulf %17, %13 : vector<8x128xf32>
    %19 = arith.addf %18, %16 : vector<8x128xf32>
    %20 = arith.index_cast %c0_i32_16 : i32 to index
    %c0_21 = arith.constant 0 : index
    %c0_22 = arith.constant 0 : index
    %21 = vector.load %arg10[%20, %c0_21, %c0_22] : memref<8x8x128xf32, #tpu.memory_space<vmem>>, vector<1x8x128xf32>
    %22 = vector.shape_cast %21 : vector<1x8x128xf32> to vector<8x128xf32>
    %23 = arith.addf %19, %22 : vector<8x128xf32>
    %24 = math.tanh %23 : vector<8x128xf32>
    %25 = arith.index_cast %c0_i32_16 : i32 to index
    %c0_23 = arith.constant 0 : index
    %c0_24 = arith.constant 0 : index
    %26 = vector.load %arg7[%25, %c0_23, %c0_24] : memref<8x8x128xf32, #tpu.memory_space<vmem>>, vector<1x8x128xf32>
    %27 = vector.shape_cast %26 : vector<1x8x128xf32> to vector<8x128xf32>
    %28 = vector.shape_cast %24 : vector<8x128xf32> to vector<1x8x128xf32>
    tpu.vector_store %arg7[%25, %c0_23, %c0_24], %28 {strides = array<i32>} : memref<8x8x128xf32, #tpu.memory_space<vmem>>, vector<1x8x128xf32>,
    %c1_i32 = arith.constant 1 : i32
    %c0_25 = arith.constant 0 : index
    %c0_26 = arith.constant 0 : index
    %29 = vector.load %arg6[%c0_25, %c0_26] : memref<128x128xf32, #tpu.memory_space<vmem>>, vector<128x128xf32>
    %cst_27 = arith.constant dense<0.000000e+00> : vector<8x128xf32>
    %30 = tpu.matmul %24, %29, %cst_27 {dimension_numbers = #tpu.dot_dimension_numbers<[1], [0], [0], [1], [0, 0, 1, 1], [], []>} : vector<8x128xf32>, vector<128x128xf32>, vector<8x128xf32> -> vector<8x128xf32>
    %cst_28 = arith.constant 8.000000e-01 : f32
    %31 = vector.broadcast %cst_28 : f32 to vector<8x128xf32>
    %32 = arith.mulf %31, %23 : vector<8x128xf32>
    %33 = arith.addf %32, %30 : vector<8x128xf32>
    %34 = arith.index_cast %c1_i32 : i32 to index
    %c0_29 = arith.constant 0 : index
    %c0_30 = arith.constant 0 : index
    %35 = vector.load %arg10[%34, %c0_29, %c0_30] : memref<8x8x128xf32, #tpu.memory_space<vmem>>, vector<1x8x128xf32>
    %36 = vector.shape_cast %35 : vector<1x8x128xf32> to vector<8x128xf32>
    %37 = arith.addf %33, %36 : vector<8x128xf32>
    %38 = math.tanh %37 : vector<8x128xf32>
    %39 = arith.index_cast %c1_i32 : i32 to index
    %c0_31 = arith.constant 0 : index
    %c0_32 = arith.constant 0 : index
    %40 = vector.load %arg7[%39, %c0_31, %c0_32] : memref<8x8x128xf32, #tpu.memory_space<vmem>>, vector<1x8x128xf32>
    %41 = vector.shape_cast %40 : vector<1x8x128xf32> to vector<8x128xf32>
    %42 = vector.shape_cast %38 : vector<8x128xf32> to vector<1x8x128xf32>
    tpu.vector_store %arg7[%39, %c0_31, %c0_32], %42 {strides = array<i32>} : memref<8x8x128xf32, #tpu.memory_space<vmem>>, vector<1x8x128xf32>,
    %c2_i32 = arith.constant 2 : i32
    %c0_33 = arith.constant 0 : index
    %c0_34 = arith.constant 0 : index
    %43 = vector.load %arg6[%c0_33, %c0_34] : memref<128x128xf32, #tpu.memory_space<vmem>>, vector<128x128xf32>
    %cst_35 = arith.constant dense<0.000000e+00> : vector<8x128xf32>
    %44 = tpu.matmul %38, %43, %cst_35 {dimension_numbers = #tpu.dot_dimension_numbers<[1], [0], [0], [1], [0, 0, 1, 1], [], []>} : vector<8x128xf32>, vector<128x128xf32>, vector<8x128xf32> -> vector<8x128xf32>
    %cst_36 = arith.constant 8.000000e-01 : f32
    %45 = vector.broadcast %cst_36 : f32 to vector<8x128xf32>
    %46 = arith.mulf %45, %37 : vector<8x128xf32>
    %47 = arith.addf %46, %44 : vector<8x128xf32>
    %48 = arith.index_cast %c2_i32 : i32 to index
    %c0_37 = arith.constant 0 : index
    %c0_38 = arith.constant 0 : index
    %49 = vector.load %arg10[%48, %c0_37, %c0_38] : memref<8x8x128xf32, #tpu.memory_space<vmem>>, vector<1x8x128xf32>
    %50 = vector.shape_cast %49 : vector<1x8x128xf32> to vector<8x128xf32>
    %51 = arith.addf %47, %50 : vector<8x128xf32>
    %52 = math.tanh %51 : vector<8x128xf32>
    %53 = arith.index_cast %c2_i32 : i32 to index
    %c0_39 = arith.constant 0 : index
    %c0_40 = arith.constant 0 : index
    %54 = vector.load %arg7[%53, %c0_39, %c0_40] : memref<8x8x128xf32, #tpu.memory_space<vmem>>, vector<1x8x128xf32>
    %55 = vector.shape_cast %54 : vector<1x8x128xf32> to vector<8x128xf32>
    %56 = vector.shape_cast %52 : vector<8x128xf32> to vector<1x8x128xf32>
    tpu.vector_store %arg7[%53, %c0_39, %c0_40], %56 {strides = array<i32>} : memref<8x8x128xf32, #tpu.memory_space<vmem>>, vector<1x8x128xf32>,
    %c3_i32 = arith.constant 3 : i32
    %c0_41 = arith.constant 0 : index
    %c0_42 = arith.constant 0 : index
    %57 = vector.load %arg6[%c0_41, %c0_42] : memref<128x128xf32, #tpu.memory_space<vmem>>, vector<128x128xf32>
    %cst_43 = arith.constant dense<0.000000e+00> : vector<8x128xf32>
    %58 = tpu.matmul %52, %57, %cst_43 {dimension_numbers = #tpu.dot_dimension_numbers<[1], [0], [0], [1], [0, 0, 1, 1], [], []>} : vector<8x128xf32>, vector<128x128xf32>, vector<8x128xf32> -> vector<8x128xf32>
    %cst_44 = arith.constant 8.000000e-01 : f32
    %59 = vector.broadcast %cst_44 : f32 to vector<8x128xf32>
    %60 = arith.mulf %59, %51 : vector<8x128xf32>
    %61 = arith.addf %60, %58 : vector<8x128xf32>
    %62 = arith.index_cast %c3_i32 : i32 to index
    %c0_45 = arith.constant 0 : index
    %c0_46 = arith.constant 0 : index
    %63 = vector.load %arg10[%62, %c0_45, %c0_46] : memref<8x8x128xf32, #tpu.memory_space<vmem>>, vector<1x8x128xf32>
    %64 = vector.shape_cast %63 : vector<1x8x128xf32> to vector<8x128xf32>
    %65 = arith.addf %61, %64 : vector<8x128xf32>
    %66 = math.tanh %65 : vector<8x128xf32>
    %67 = arith.index_cast %c3_i32 : i32 to index
    %c0_47 = arith.constant 0 : index
    %c0_48 = arith.constant 0 : index
    %68 = vector.load %arg7[%67, %c0_47, %c0_48] : memref<8x8x128xf32, #tpu.memory_space<vmem>>, vector<1x8x128xf32>
    %69 = vector.shape_cast %68 : vector<1x8x128xf32> to vector<8x128xf32>
    %70 = vector.shape_cast %66 : vector<8x128xf32> to vector<1x8x128xf32>
    tpu.vector_store %arg7[%67, %c0_47, %c0_48], %70 {strides = array<i32>} : memref<8x8x128xf32, #tpu.memory_space<vmem>>, vector<1x8x128xf32>,
    %c4_i32 = arith.constant 4 : i32
    %c0_49 = arith.constant 0 : index
    %c0_50 = arith.constant 0 : index
    %71 = vector.load %arg6[%c0_49, %c0_50] : memref<128x128xf32, #tpu.memory_space<vmem>>, vector<128x128xf32>
    %cst_51 = arith.constant dense<0.000000e+00> : vector<8x128xf32>
    %72 = tpu.matmul %66, %71, %cst_51 {dimension_numbers = #tpu.dot_dimension_numbers<[1], [0], [0], [1], [0, 0, 1, 1], [], []>} : vector<8x128xf32>, vector<128x128xf32>, vector<8x128xf32> -> vector<8x128xf32>
    %cst_52 = arith.constant 8.000000e-01 : f32
    %73 = vector.broadcast %cst_52 : f32 to vector<8x128xf32>
    %74 = arith.mulf %73, %65 : vector<8x128xf32>
    %75 = arith.addf %74, %72 : vector<8x128xf32>
    %76 = arith.index_cast %c4_i32 : i32 to index
    %c0_53 = arith.constant 0 : index
    %c0_54 = arith.constant 0 : index
    %77 = vector.load %arg10[%76, %c0_53, %c0_54] : memref<8x8x128xf32, #tpu.memory_space<vmem>>, vector<1x8x128xf32>
    %78 = vector.shape_cast %77 : vector<1x8x128xf32> to vector<8x128xf32>
    %79 = arith.addf %75, %78 : vector<8x128xf32>
    %80 = math.tanh %79 : vector<8x128xf32>
    %81 = arith.index_cast %c4_i32 : i32 to index
    %c0_55 = arith.constant 0 : index
    %c0_56 = arith.constant 0 : index
    %82 = vector.load %arg7[%81, %c0_55, %c0_56] : memref<8x8x128xf32, #tpu.memory_space<vmem>>, vector<1x8x128xf32>
    %83 = vector.shape_cast %82 : vector<1x8x128xf32> to vector<8x128xf32>
    %84 = vector.shape_cast %80 : vector<8x128xf32> to vector<1x8x128xf32>
    tpu.vector_store %arg7[%81, %c0_55, %c0_56], %84 {strides = array<i32>} : memref<8x8x128xf32, #tpu.memory_space<vmem>>, vector<1x8x128xf32>,
    %c5_i32 = arith.constant 5 : i32
    %c0_57 = arith.constant 0 : index
    %c0_58 = arith.constant 0 : index
    %85 = vector.load %arg6[%c0_57, %c0_58] : memref<128x128xf32, #tpu.memory_space<vmem>>, vector<128x128xf32>
    %cst_59 = arith.constant dense<0.000000e+00> : vector<8x128xf32>
    %86 = tpu.matmul %80, %85, %cst_59 {dimension_numbers = #tpu.dot_dimension_numbers<[1], [0], [0], [1], [0, 0, 1, 1], [], []>} : vector<8x128xf32>, vector<128x128xf32>, vector<8x128xf32> -> vector<8x128xf32>
    %cst_60 = arith.constant 8.000000e-01 : f32
    %87 = vector.broadcast %cst_60 : f32 to vector<8x128xf32>
    %88 = arith.mulf %87, %79 : vector<8x128xf32>
    %89 = arith.addf %88, %86 : vector<8x128xf32>
    %90 = arith.index_cast %c5_i32 : i32 to index
    %c0_61 = arith.constant 0 : index
    %c0_62 = arith.constant 0 : index
    %91 = vector.load %arg10[%90, %c0_61, %c0_62] : memref<8x8x128xf32, #tpu.memory_space<vmem>>, vector<1x8x128xf32>
    %92 = vector.shape_cast %91 : vector<1x8x128xf32> to vector<8x128xf32>
    %93 = arith.addf %89, %92 : vector<8x128xf32>
    %94 = math.tanh %93 : vector<8x128xf32>
    %95 = arith.index_cast %c5_i32 : i32 to index
    %c0_63 = arith.constant 0 : index
    %c0_64 = arith.constant 0 : index
    %96 = vector.load %arg7[%95, %c0_63, %c0_64] : memref<8x8x128xf32, #tpu.memory_space<vmem>>, vector<1x8x128xf32>
    %97 = vector.shape_cast %96 : vector<1x8x128xf32> to vector<8x128xf32>
    %98 = vector.shape_cast %94 : vector<8x128xf32> to vector<1x8x128xf32>
    tpu.vector_store %arg7[%95, %c0_63, %c0_64], %98 {strides = array<i32>} : memref<8x8x128xf32, #tpu.memory_space<vmem>>, vector<1x8x128xf32>,
    %c6_i32 = arith.constant 6 : i32
    %c0_65 = arith.constant 0 : index
    %c0_66 = arith.constant 0 : index
    %99 = vector.load %arg6[%c0_65, %c0_66] : memref<128x128xf32, #tpu.memory_space<vmem>>, vector<128x128xf32>
    %cst_67 = arith.constant dense<0.000000e+00> : vector<8x128xf32>
    %100 = tpu.matmul %94, %99, %cst_67 {dimension_numbers = #tpu.dot_dimension_numbers<[1], [0], [0], [1], [0, 0, 1, 1], [], []>} : vector<8x128xf32>, vector<128x128xf32>, vector<8x128xf32> -> vector<8x128xf32>
    %cst_68 = arith.constant 8.000000e-01 : f32
    %101 = vector.broadcast %cst_68 : f32 to vector<8x128xf32>
    %102 = arith.mulf %101, %93 : vector<8x128xf32>
    %103 = arith.addf %102, %100 : vector<8x128xf32>
    %104 = arith.index_cast %c6_i32 : i32 to index
    %c0_69 = arith.constant 0 : index
    %c0_70 = arith.constant 0 : index
    %105 = vector.load %arg10[%104, %c0_69, %c0_70] : memref<8x8x128xf32, #tpu.memory_space<vmem>>, vector<1x8x128xf32>
    %106 = vector.shape_cast %105 : vector<1x8x128xf32> to vector<8x128xf32>
    %107 = arith.addf %103, %106 : vector<8x128xf32>
    %108 = math.tanh %107 : vector<8x128xf32>
    %109 = arith.index_cast %c6_i32 : i32 to index
    %c0_71 = arith.constant 0 : index
    %c0_72 = arith.constant 0 : index
    %110 = vector.load %arg7[%109, %c0_71, %c0_72] : memref<8x8x128xf32, #tpu.memory_space<vmem>>, vector<1x8x128xf32>
    %111 = vector.shape_cast %110 : vector<1x8x128xf32> to vector<8x128xf32>
    %112 = vector.shape_cast %108 : vector<8x128xf32> to vector<1x8x128xf32>
    tpu.vector_store %arg7[%109, %c0_71, %c0_72], %112 {strides = array<i32>} : memref<8x8x128xf32, #tpu.memory_space<vmem>>, vector<1x8x128xf32>,
    %c7_i32 = arith.constant 7 : i32
    %c0_73 = arith.constant 0 : index
    %c0_74 = arith.constant 0 : index
    %113 = vector.load %arg6[%c0_73, %c0_74] : memref<128x128xf32, #tpu.memory_space<vmem>>, vector<128x128xf32>
    %cst_75 = arith.constant dense<0.000000e+00> : vector<8x128xf32>
    %114 = tpu.matmul %108, %113, %cst_75 {dimension_numbers = #tpu.dot_dimension_numbers<[1], [0], [0], [1], [0, 0, 1, 1], [], []>} : vector<8x128xf32>, vector<128x128xf32>, vector<8x128xf32> -> vector<8x128xf32>
    %cst_76 = arith.constant 8.000000e-01 : f32
    %115 = vector.broadcast %cst_76 : f32 to vector<8x128xf32>
    %116 = arith.mulf %115, %107 : vector<8x128xf32>
    %117 = arith.addf %116, %114 : vector<8x128xf32>
    %118 = arith.index_cast %c7_i32 : i32 to index
    %c0_77 = arith.constant 0 : index
    %c0_78 = arith.constant 0 : index
    %119 = vector.load %arg10[%118, %c0_77, %c0_78] : memref<8x8x128xf32, #tpu.memory_space<vmem>>, vector<1x8x128xf32>
    %120 = vector.shape_cast %119 : vector<1x8x128xf32> to vector<8x128xf32>
    %121 = arith.addf %117, %120 : vector<8x128xf32>
    %122 = math.tanh %121 : vector<8x128xf32>
    %123 = arith.index_cast %c7_i32 : i32 to index
    %c0_79 = arith.constant 0 : index
    %c0_80 = arith.constant 0 : index
    %124 = vector.load %arg7[%123, %c0_79, %c0_80] : memref<8x8x128xf32, #tpu.memory_space<vmem>>, vector<1x8x128xf32>
    %125 = vector.shape_cast %124 : vector<1x8x128xf32> to vector<8x128xf32>
    %126 = vector.shape_cast %122 : vector<8x128xf32> to vector<1x8x128xf32>
    tpu.vector_store %arg7[%123, %c0_79, %c0_80], %126 {strides = array<i32>} : memref<8x8x128xf32, #tpu.memory_space<vmem>>, vector<1x8x128xf32>,
    %c8_i32 = arith.constant 8 : i32
    %c0_81 = arith.constant 0 : index
    %c0_82 = arith.constant 0 : index
    %127 = vector.load %arg8[%c0_81, %c0_82] : memref<8x128xf32, #tpu.memory_space<vmem>>, vector<8x128xf32>
    tpu.vector_store %arg8[%c0_81, %c0_82], %121 {strides = array<i32>} : memref<8x128xf32, #tpu.memory_space<vmem>>, vector<8x128xf32>,
    %c0_83 = arith.constant 0 : index
    %c0_84 = arith.constant 0 : index
    %128 = vector.load %arg9[%c0_83, %c0_84] : memref<8x128xf32, #tpu.memory_space<vmem>>, vector<8x128xf32>
    tpu.vector_store %arg9[%c0_83, %c0_84], %122 {strides = array<i32>} : memref<8x128xf32, #tpu.memory_space<vmem>>, vector<8x128xf32>,
    return
  }
  func.func @transform_0(%arg0: i32, %arg1: i32) -> (i32, i32, i32) {
    %c0_i32 = arith.constant 0 : i32
    %c0_i32_0 = arith.constant 0 : i32
    return %arg1, %arg0, %c0_i32 : i32, i32, i32
  }
  func.func @transform_1(%arg0: i32, %arg1: i32) -> (i32, i32, i32) {
    %c0_i32 = arith.constant 0 : i32
    %c0_i32_0 = arith.constant 0 : i32
    return %arg1, %arg0, %c0_i32 : i32, i32, i32
  }
  func.func @transform_2(%arg0: i32, %arg1: i32) -> (i32, i32) {
    %c0_i32 = arith.constant 0 : i32
    %c0_i32_0 = arith.constant 0 : i32
    %c0_i32_1 = arith.constant 0 : i32
    return %c0_i32, %c0_i32_0 : i32, i32
  }
  func.func @transform_3(%arg0: i32, %arg1: i32) -> (i32, i32) {
    %c0_i32 = arith.constant 0 : i32
    %c0_i32_0 = arith.constant 0 : i32
    %c0_i32_1 = arith.constant 0 : i32
    return %c0_i32, %c0_i32_0 : i32, i32
  }
  func.func @transform_4(%arg0: i32, %arg1: i32) -> (i32, i32) {
    %c0_i32 = arith.constant 0 : i32
    %c0_i32_0 = arith.constant 0 : i32
    %c0_i32_1 = arith.constant 0 : i32
    return %c0_i32, %c0_i32_0 : i32, i32
  }
  func.func @transform_5(%arg0: i32, %arg1: i32) -> (i32, i32, i32) {
    %c0_i32 = arith.constant 0 : i32
    %c0_i32_0 = arith.constant 0 : i32
    return %arg1, %arg0, %c0_i32 : i32, i32, i32
  }
}

</mosaic_0001>

<bundles_post_ra>
// kernel: tpu_custom_call.1
= control target key start
LH: loop header
LB: loop body
LE: loop exit
PB: predicated region body
PF: predicated region fallthrough
CT: control target
= control target key end

     0   :  { %10 = vsyncpa [#allocation6], 0  ;;  %s2017_s0 = inlined_call_operand.vmem [shape: f32[8,8,4], index: 0, kind: input, shape index: {}]   ;;  %s2018_s1 = inlined_call_operand.vmem [shape: f32[8,8,128], index: 1, kind: input, shape index: {}]   ;;  %s2019_s2 = inlined_call_operand.vmem [shape: f32[1,128], index: 2, kind: input, shape index: {}]   ;;  %s2020_s3 = inlined_call_operand.vmem [shape: f32[4,128], index: 3, kind: input, shape index: {}]   ;;  %s2021_s4 = inlined_call_operand.hbm [shape: f32[128,128], index: 4, kind: input, shape index: {}]   ;;  %s2022_s5 = inlined_call_operand.hbm [shape: f32[8,8,128], index: 5, kind: output, shape index: {}]  }
   0x1   :  { %11 = vsyncpa [#allocation7], 0  ;;  %s1709_s18 = smov [#allocation5]   ;;  %s1661_s22 = scalar_lea.hbm %s2021_s4, 2048 }
   0x2   :  { %s25_s19 = sshll.u32 %s1709_s18, 4  ;;  %p1662_p0 = scmp.ne.s32.totalorder %s2021_s4, %s1661_s22  ;;  %s26_s19 = int_to_ptr.vmem [resolvable:$true] %s25_s19 }
   0x3   :  { %p1665_p1 = scmp.lt.u32.totalorder %s1661_s22, %s2021_s4 }
   0x5   :  { %p1667_p2 = pnand %p1665_p1, %p1662_p0 }
   0x7   :  { %1670 = shalt.err (!%p1667_p2)
}
   0x8   :  { %s1671_s27 = scalar_lea.vmem %s26_s19, 2048  ;;  %p1676_p4 = scmp.lt.s32.totalorder %s26_s19, %s26_s19 }
   0x9   :  { %p1672_p3 = scmp.ne.s32.totalorder %s26_s19, %s1671_s27  ;;  %p1677_p5 = scmp.lt.s32.totalorder %s1671_s27, %s1671_s27 }
   0xb   :  { %p1678_p6 = por %p1677_p5, %p1676_p4 }
   0xd   :  { %p1679_p7 = pnand %p1678_p6, %p1672_p3 }
   0xf   :  { %1682 = shalt.err (!%p1679_p7)
}
  0x10   :  { %s1710_s28 = smov 128   ;;  %s1711_s29 = smov 8  }
  0x11   :  { %31 = dma.hbm_to_vmem [thread:$0]  %s2021_s4, 2048, %s26_s19, [#allocation6], %s1710_s28, %s1710_s28, %s1711_s29  }
  0x12   :  { %1705 = dma.done.wait [#allocation6], 2048  }
  0x13   :  { %1706 = vsyncadd [#allocation6], 4294965248  ;;  %v1712_v0 = vmov 0.0|0.0   ;;  %vm1713_vm0 = vmmov 0   ;;  %v1714_v1 = vmov 0.0   ;;  %v226_v2 = vld [vmem:[#allocation5] sm:$0xff] }
  0x14   :  { %1444 = vmatprep.subr.bf16.mxu1 %v1712_v0  ;;  %1196 = vmatprep.mubr.msk.f32.mxu1 %vm1713_vm0, %v1714_v1  ;;  %v227_v3 = vld [vmem:[#allocation5 + $0x8] sm:$0xff]  ;;  %v228_v4 = vld [vmem:[#allocation5 + $0x10] sm:$0xff]  ;;  %v229_v6 = vld [vmem:[#allocation5 + $0x18] sm:$0xff]  ;;  %vm83_vm1 = vcmask 1043456   ;;  %vm58_vm2 = vcmask 31744   ;;  %s1715_s13 = smov [#allocation8]  }
  0x15   :  { %v1764_v5 = vpack.c.bf16 %v227_v3, %v226_v2  ;;  %v1767_v7 = vpack.c.bf16 %v229_v6, %v228_v4  ;;  %v230_v8 = vld [vmem:[#allocation5 + $0x20] sm:$0xff]  ;;  %v231_v9 = vld [vmem:[#allocation5 + $0x28] sm:$0xff]  ;;  %v232_v14 = vld [vmem:[#allocation5 + $0x30] sm:$0xff]  ;;  %s983_s14 = sshll.u32 %s1715_s13, 4  ;;  %s984_s14 = int_to_ptr.vmem [resolvable:$true] %s983_s14 }
  0x16   :  { %v57_v10 = vld [vmem:[%s2020_s3] sm:$0xf]  ;;  %v50_v12 = vld [vmem:[%s2017_s0 + $0x8] sm:$0xff]  ;;  %v1781_v13 = vpack.c.bf16 %v231_v9, %v230_v8  ;;  %v233_v15 = vld [vmem:[#allocation5 + $0x38] sm:$0xff]  ;;  %s1683_s15 = scalar_lea.vmem %s984_s14, 1024  ;;  %p1688_p9 = scmp.lt.s32.totalorder %s984_s14, %s984_s14 }
  0x17   :  { %1446 = vmatpush3.bf16.msra.mxu1 %v1764_v5  ;;  %1150 = vmatprep.subr.msk.mxu0 %vm83_vm1, %v57_v10  ;;  %v49_v11 = vld [vmem:[%s2017_s0] sm:$0xff]  ;;  %v1789_v16 = vpack.c.bf16 %v233_v15, %v232_v14  ;;  %v235_v18 = vld [vmem:[#allocation5 + $0x48] sm:$0xff]  ;;  %v236_v20 = vld [vmem:[#allocation5 + $0x50] sm:$0xff]  ;;  %p1684_p8 = scmp.ne.s32.totalorder %s984_s14, %s1683_s15  ;;  %p1689_p10 = scmp.lt.s32.totalorder %s1683_s15, %s1683_s15 }
  0x18   :  { %1447 = vmatprep.subr.bf16.mxu1 %v1712_v0  ;;  %1151 = vmatpush3.msk.msra.mxu0 %vm83_vm1, %v57_v10  ;;  %v234_v17 = vld [vmem:[#allocation5 + $0x40] sm:$0xff]  ;;  %v237_v21 = vld [vmem:[#allocation5 + $0x58] sm:$0xff]  ;;  %v239_v25 = vld [vmem:[#allocation5 + $0x68] sm:$0xff] }
  0x19   :  { %1152 = vmatprep.mubr.msk.f32.mxu0 %vm58_vm2, %v49_v11  ;;  %1468 = vmatprep.subr.bf16.mxu0 %v1712_v0  ;;  %v1795_v19 = vpack.c.bf16 %v235_v18, %v234_v17  ;;  %v1802_v22 = vld [vmem:[%s2019_s2] ss:$0 sm:$0xff]  ;;  %v1806_v23 = vpack.c.bf16 %v237_v21, %v236_v20  ;;  %v240_v27 = vld [vmem:[#allocation5 + $0x70] sm:$0xff]  ;;  %v241_v28 = vld [vmem:[#allocation5 + $0x78] sm:$0xff]  ;;  %p1690_p11 = por %p1689_p10, %p1688_p9 }
  0x1a   :  { %1153 = vmatmul.mubr.msk.f32.vlgmr.msra.gmra.mrb[0].mxu0 %vm58_vm2, %v50_v12  ;;  %v238_v24 = vld [vmem:[#allocation5 + $0x60] sm:$0xff]  ;;  %1643 = vtanh.f32 %v1802_v22  ;;  %v1819_v29 = vpack.c.bf16 %v241_v28, %v240_v27  ;;  %v51_v31 = vld [vmem:[%s2017_s0 + $0x10] sm:$0xff]  ;;  %v52_v32 = vld [vmem:[%s2017_s0 + $0x18] sm:$0xff]  ;;  %v312_v41 = vmul.f32 0.8, %v1802_v22 }
  0x1b   :  { %1449 = vmatpush3.bf16.msra.mxu1 %v1767_v7  ;;  %1470 = vmatpush3.bf16.msra.mxu0 %v1764_v5  ;;  %v1813_v26 = vpack.c.bf16 %v239_v25, %v238_v24  ;;  %v53_v33 = vld [vmem:[%s2017_s0 + $0x20] sm:$0xff]  ;;  %v54_v34 = vld [vmem:[%s2017_s0 + $0x28] sm:$0xff]  ;;  %v55_v35 = vld [vmem:[%s2017_s0 + $0x30] sm:$0xff]  ;;  %p1691_p12 = pnand %p1690_p11, %p1684_p8 }
  0x1c   :  { %1450 = vmatprep.subr.bf16.mxu1 %v1712_v0  ;;  %1471 = vmatprep.subr.bf16.mxu0 %v1712_v0  ;;  %v56_v36 = vld [vmem:[%s2017_s0 + $0x38] sm:$0xff]  ;;  %v192_v39 = vld [vmem:[%s2018_s1] sm:$0xff]  ;;  %v193_v54 = vld [vmem:[%s2018_s1 + $0x8] sm:$0xff] }
  0x1d   :  { %1155 = vmatprep.mubr.msk.f32.mxu0 %vm58_vm2, %v51_v31  ;;  %v200_v40 = vmul.f32 0.05, %v192_v39  ;;  %v201_v55 = vmul.f32 0.05, %v193_v54  ;;  %v194_v63 = vld [vmem:[%s2018_s1 + $0x10] sm:$0xff]  ;;  %v195_v12 = vld [vmem:[%s2018_s1 + $0x18] sm:$0xff] }
  0x1e   :  { %1156 = vmatmul.mubr.msk.f32.gmra.mrb[2].mxu0 %vm58_vm2, %v52_v32  ;;  %v202_v2 = vmul.f32 0.05, %v194_v63  ;;  %v203_v14 = vmul.f32 0.05, %v195_v12  ;;  %v196_v25 = vld [vmem:[%s2018_s1 + $0x20] sm:$0xff] }
  0x1f   :  { %1452 = vmatpush3.bf16.msra.mxu1 %v1781_v13  ;;  %1473 = vmatpush3.bf16.msra.mxu0 %v1767_v7  ;;  %v204_v27 = vmul.f32 0.05, %v196_v25 }
  0x20   :  { %1453 = vmatprep.subr.bf16.mxu1 %v1712_v0  ;;  %1474 = vmatprep.subr.bf16.mxu0 %v1712_v0 }
  0x21   :  { %1158 = vmatprep.mubr.msk.f32.mxu0 %vm58_vm2, %v53_v33 }
  0x22   :  { %1159 = vmatmul.mubr.msk.f32.gmra.mrb[4].mxu0 %vm58_vm2, %v54_v34 }
  0x23   :  { %1455 = vmatpush3.bf16.msra.mxu1 %v1789_v16  ;;  %1476 = vmatpush3.bf16.msra.mxu0 %v1781_v13 }
  0x24   :  { %1456 = vmatprep.subr.bf16.mxu1 %v1712_v0  ;;  %1477 = vmatprep.subr.bf16.mxu0 %v1712_v0  ;;  %v1644_v30 = vpop.eup %1643 }
  0x25   :  { %1161 = vmatprep.mubr.msk.f32.mxu0 %vm58_vm2, %v55_v35 }
  0x26   :  { %1162 = vmatmul.mubr.msk.f32.gmra.mrb[6].mxu0 %vm58_vm2, %v56_v36 }
  0x27   :  { %1458 = vmatpush3.bf16.msra.mxu1 %v1795_v19  ;;  %1479 = vmatpush3.bf16.msra.mxu0 %v1789_v16 }
  0x28   :  { %1459 = vmatprep.subr.bf16.mxu1 %v1712_v0  ;;  %1480 = vmatprep.subr.bf16.mxu0 %v1712_v0 }
  0x29   :  { %1231 = vmatprep.mubr.msk.f32.mxu0 %vm1713_vm0, %v1714_v1 }
  0x2b   :  { %1461 = vmatpush3.bf16.msra.mxu1 %v1806_v23  ;;  %1482 = vmatpush3.bf16.msra.mxu0 %v1795_v19 }
  0x2c   :  { %1462 = vmatprep.subr.bf16.mxu1 %v1712_v0  ;;  %1483 = vmatprep.subr.bf16.mxu0 %v1712_v0 }
  0x2f   :  { %1464 = vmatpush3.bf16.msra.mxu1 %v1813_v26  ;;  %1485 = vmatpush3.bf16.msra.mxu0 %v1806_v23 }
  0x30   :  { %1465 = vmatprep.subr.bf16.mxu1 %v1712_v0  ;;  %1486 = vmatprep.subr.bf16.mxu0 %v1712_v0 }
  0x33   :  { %1467 = vmatpush3.bf16.msra.mxu1 %v1819_v29  ;;  %1488 = vmatpush3.bf16.msra.mxu0 %v1813_v26 }
  0x34   :  { %1492 = vmatprep.subr.bf16.mxu1 %v1712_v0  ;;  %1489 = vmatprep.subr.bf16.mxu0 %v1712_v0 }
  0x36   :  { %1197 = vmatmul.mubr.f32.vlgmr.msra.gmra.mrb[0].mxu1 %v1644_v30 }
  0x37   :  { %1494 = vmatpush3.bf16.msra.mxu1 %v1764_v5  ;;  %1266 = vmatprep.mubr.msk.f32.mxu1 %vm1713_vm0, %v1714_v1 }
  0x38   :  { %1495 = vmatprep.subr.bf16.mxu1 %v1712_v0  ;;  %1491 = vmatpush3.bf16.msra.mxu0 %v1819_v29 }
  0x39   :  { %1516 = vmatprep.subr.bf16.mxu0 %v1712_v0 }
  0x3b   :  { %1497 = vmatpush3.bf16.msra.mxu1 %v1767_v7 }
  0x3c   :  { %1498 = vmatprep.subr.bf16.mxu1 %v1712_v0 }
  0x3f   :  { %1500 = vmatpush3.bf16.msra.mxu1 %v1781_v13 }
  0x40   :  { %1501 = vmatprep.subr.bf16.mxu1 %v1712_v0 }
  0x43   :  { %1503 = vmatpush3.bf16.msra.mxu1 %v1789_v16 }
  0x44   :  { %1504 = vmatprep.subr.bf16.mxu1 %v1712_v0 }
  0x47   :  { %1506 = vmatpush3.bf16.msra.mxu1 %v1795_v19 }
  0x48   :  { %1507 = vmatprep.subr.bf16.mxu1 %v1712_v0 }
  0x4b   :  { %1509 = vmatpush3.bf16.msra.mxu1 %v1806_v23 }
  0x4c   :  { %1510 = vmatprep.subr.bf16.mxu1 %v1712_v0 }
  0x4f   :  { %1512 = vmatpush3.bf16.msra.mxu1 %v1813_v26 }
  0x50   :  { %1513 = vmatprep.subr.bf16.mxu1 %v1712_v0 }
  0x53   :  { %1515 = vmatpush3.bf16.msra.mxu1 %v1819_v29 }
  0x54   :  { %1540 = vmatprep.subr.bf16.mxu1 %v1712_v0 }
  0xed   :  { %v1154_v37 = vpop.f32.mrb[0].mxu0 }
  0xee   :  { %v153_v38 = vpop.f32.mrb[1].mxu0  ;;  %v209_v58 = vadd.f32 %v1154_v37, %v201_v55 }
  0xef   :  { %v208_v42 = vadd.f32 %v200_v40, %v153_v38 }
  0xf1   :  { %v1896_v48 = vpop.f32.mrb[2].mxu0 }
  0xf2   :  { %v163_v49 = vpop.f32.mrb[3].mxu0  ;;  %v211_v18 = vadd.f32 %v1896_v48, %v203_v14 }
  0xf3   :  { %v210_v6 = vadd.f32 %v202_v2, %v163_v49 }
  0xf5   :  { %v1898_v50 = vpop.f32.mrb[4].mxu0 }
  0xf6   :  { %v1900_v51 = vpop.f32.mrb[5].mxu0 }
  0xf7   :  { %v212_v31 = vadd.f32 %v204_v27, %v1900_v51 }
  0xf9   :  { %v1902_v52 = vpop.f32.mrb[6].mxu0 }
  0xfa   :  { %v1904_v53 = vpop.f32.mrb[7].mxu0 }
 0x109   :  { %v308_v43 = vpop.f32.mrb[0].mxu1 }
 0x10a   :  { %v313_v44 = vadd.f32 %v312_v41, %v308_v43  ;;  %v1198_v45 = vpop.f32.mrb[1].mxu1 }
 0x10c   :  { %v315_v46 = vadd.f32 %v313_v44, %v208_v42  ;;  %v199_v44 = vld [vmem:[%s2018_s1 + $0x38] sm:$0xff] }
 0x10d   :  { %v207_v45 = vmul.f32 0.05, %v199_v44 }
 0x10e   :  { %1645 = vtanh.f32 %v315_v46  ;;  %v404_v56 = vmul.f32 0.8, %v315_v46 }
 0x10f   :  { %v215_v48 = vadd.f32 %v1902_v52, %v207_v45 }
 0x118   :  { %v1646_v47 = vpop.eup %1645 }
 0x119   :  { %317 = vst [vmem:[#allocation8] sm:$0xff] %v1646_v47  ;;  %1232 = vmatmul.mubr.f32.vlgmr.msra.gmra.mrb[8].mxu0 %v1646_v47 }
 0x11a   :  { %1518 = vmatpush3.bf16.msra.mxu0 %v1764_v5  ;;  %1301 = vmatprep.mubr.msk.f32.mxu0 %vm1713_vm0, %v1714_v1 }
 0x11b   :  { %1519 = vmatprep.subr.bf16.mxu0 %v1712_v0 }
 0x11e   :  { %1521 = vmatpush3.bf16.msra.mxu0 %v1767_v7 }
 0x11f   :  { %1522 = vmatprep.subr.bf16.mxu0 %v1712_v0 }
 0x122   :  { %1524 = vmatpush3.bf16.msra.mxu0 %v1781_v13 }
 0x123   :  { %1525 = vmatprep.subr.bf16.mxu0 %v1712_v0 }
 0x126   :  { %1527 = vmatpush3.bf16.msra.mxu0 %v1789_v16 }
 0x127   :  { %1528 = vmatprep.subr.bf16.mxu0 %v1712_v0 }
 0x12a   :  { %1530 = vmatpush3.bf16.msra.mxu0 %v1795_v19 }
 0x12b   :  { %1531 = vmatprep.subr.bf16.mxu0 %v1712_v0 }
 0x12e   :  { %1533 = vmatpush3.bf16.msra.mxu0 %v1806_v23 }
 0x12f   :  { %1534 = vmatprep.subr.bf16.mxu0 %v1712_v0 }
 0x132   :  { %1536 = vmatpush3.bf16.msra.mxu0 %v1813_v26 }
 0x133   :  { %1537 = vmatprep.subr.bf16.mxu0 %v1712_v0 }
 0x136   :  { %1539 = vmatpush3.bf16.msra.mxu0 %v1819_v29 }
 0x137   :  { %1564 = vmatprep.subr.bf16.mxu0 %v1712_v0 }
 0x1ec   :  { %v400_v57 = vpop.f32.mrb[8].mxu0 }
 0x1ed   :  { %v405_v59 = vadd.f32 %v404_v56, %v400_v57  ;;  %v1233_v60 = vpop.f32.mrb[9].mxu0 }
 0x1ef   :  { %v408_v61 = vadd.f32 %v405_v59, %v209_v58 }
 0x1f1   :  { %1647 = vtanh.f32 %v408_v61  ;;  %v498_v3 = vmul.f32 0.8, %v408_v61 }
 0x1fb   :  { %v1648_v62 = vpop.eup %1647 }
 0x1fc   :  { %411 = vst [vmem:[#allocation8 + $0x8] sm:$0xff] %v1648_v62  ;;  %1267 = vmatmul.mubr.f32.vlgmr.msra.gmra.mrb[2].mxu1 %v1648_v62 }
 0x1fd   :  { %1542 = vmatpush3.bf16.msra.mxu1 %v1764_v5  ;;  %1336 = vmatprep.mubr.msk.f32.mxu1 %vm1713_vm0, %v1714_v1 }
 0x1fe   :  { %1543 = vmatprep.subr.bf16.mxu1 %v1712_v0 }
 0x201   :  { %1545 = vmatpush3.bf16.msra.mxu1 %v1767_v7 }
 0x202   :  { %1546 = vmatprep.subr.bf16.mxu1 %v1712_v0 }
 0x205   :  { %1548 = vmatpush3.bf16.msra.mxu1 %v1781_v13 }
 0x206   :  { %1549 = vmatprep.subr.bf16.mxu1 %v1712_v0 }
 0x209   :  { %1551 = vmatpush3.bf16.msra.mxu1 %v1789_v16 }
 0x20a   :  { %1552 = vmatprep.subr.bf16.mxu1 %v1712_v0 }
 0x20d   :  { %1554 = vmatpush3.bf16.msra.mxu1 %v1795_v19 }
 0x20e   :  { %1555 = vmatprep.subr.bf16.mxu1 %v1712_v0 }
 0x211   :  { %1557 = vmatpush3.bf16.msra.mxu1 %v1806_v23 }
 0x212   :  { %1558 = vmatprep.subr.bf16.mxu1 %v1712_v0 }
 0x215   :  { %1560 = vmatpush3.bf16.msra.mxu1 %v1813_v26 }
 0x216   :  { %1561 = vmatprep.subr.bf16.mxu1 %v1712_v0 }
 0x219   :  { %1563 = vmatpush3.bf16.msra.mxu1 %v1819_v29 }
 0x21a   :  { %1588 = vmatprep.subr.bf16.mxu1 %v1712_v0 }
 0x2cf   :  { %v494_v4 = vpop.f32.mrb[2].mxu1 }
 0x2d0   :  { %v499_v8 = vadd.f32 %v498_v3, %v494_v4  ;;  %v1268_v9 = vpop.f32.mrb[3].mxu1 }
 0x2d2   :  { %v502_v10 = vadd.f32 %v499_v8, %v210_v6 }
 0x2d4   :  { %1649 = vtanh.f32 %v502_v10  ;;  %v592_v15 = vmul.f32 0.8, %v502_v10 }
 0x2de   :  { %v1650_v11 = vpop.eup %1649 }
 0x2df   :  { %505 = vst [vmem:[#allocation8 + $0x10] sm:$0xff] %v1650_v11  ;;  %1302 = vmatmul.mubr.f32.vlgmr.msra.gmra.mrb[10].mxu0 %v1650_v11 }
 0x2e0   :  { %1566 = vmatpush3.bf16.msra.mxu0 %v1764_v5  ;;  %1371 = vmatprep.mubr.msk.f32.mxu0 %vm1713_vm0, %v1714_v1 }
 0x2e1   :  { %1567 = vmatprep.subr.bf16.mxu0 %v1712_v0 }
 0x2e4   :  { %1569 = vmatpush3.bf16.msra.mxu0 %v1767_v7 }
 0x2e5   :  { %1570 = vmatprep.subr.bf16.mxu0 %v1712_v0 }
 0x2e8   :  { %1572 = vmatpush3.bf16.msra.mxu0 %v1781_v13 }
 0x2e9   :  { %1573 = vmatprep.subr.bf16.mxu0 %v1712_v0 }
 0x2ec   :  { %1575 = vmatpush3.bf16.msra.mxu0 %v1789_v16 }
 0x2ed   :  { %1576 = vmatprep.subr.bf16.mxu0 %v1712_v0 }
 0x2f0   :  { %1578 = vmatpush3.bf16.msra.mxu0 %v1795_v19 }
 0x2f1   :  { %1579 = vmatprep.subr.bf16.mxu0 %v1712_v0 }
 0x2f4   :  { %1581 = vmatpush3.bf16.msra.mxu0 %v1806_v23 }
 0x2f5   :  { %1582 = vmatprep.subr.bf16.mxu0 %v1712_v0 }
 0x2f8   :  { %1584 = vmatpush3.bf16.msra.mxu0 %v1813_v26 }
 0x2f9   :  { %1585 = vmatprep.subr.bf16.mxu0 %v1712_v0 }
 0x2fc   :  { %1587 = vmatpush3.bf16.msra.mxu0 %v1819_v29 }
 0x2fd   :  { %1612 = vmatprep.subr.bf16.mxu0 %v1712_v0 }
 0x3b2   :  { %v588_v17 = vpop.f32.mrb[10].mxu0 }
 0x3b3   :  { %v593_v20 = vadd.f32 %v592_v15, %v588_v17  ;;  %v1303_v21 = vpop.f32.mrb[11].mxu0 }
 0x3b5   :  { %v596_v22 = vadd.f32 %v593_v20, %v211_v18 }
 0x3b7   :  { %1651 = vtanh.f32 %v596_v22  ;;  %v686_v28 = vmul.f32 0.8, %v596_v22 }
 0x3c1   :  { %v1652_v24 = vpop.eup %1651 }
 0x3c2   :  { %599 = vst [vmem:[#allocation8 + $0x18] sm:$0xff] %v1652_v24  ;;  %1337 = vmatmul.mubr.f32.vlgmr.msra.gmra.mrb[4].mxu1 %v1652_v24 }
 0x3c3   :  { %1590 = vmatpush3.bf16.msra.mxu1 %v1764_v5  ;;  %1406 = vmatprep.mubr.msk.f32.mxu1 %vm1713_vm0, %v1714_v1 }
 0x3c4   :  { %1591 = vmatprep.subr.bf16.mxu1 %v1712_v0 }
 0x3c7   :  { %1593 = vmatpush3.bf16.msra.mxu1 %v1767_v7 }
 0x3c8   :  { %1594 = vmatprep.subr.bf16.mxu1 %v1712_v0 }
 0x3cb   :  { %1596 = vmatpush3.bf16.msra.mxu1 %v1781_v13 }
 0x3cc   :  { %1597 = vmatprep.subr.bf16.mxu1 %v1712_v0 }
 0x3cf   :  { %1599 = vmatpush3.bf16.msra.mxu1 %v1789_v16 }
 0x3d0   :  { %1600 = vmatprep.subr.bf16.mxu1 %v1712_v0 }
 0x3d3   :  { %1602 = vmatpush3.bf16.msra.mxu1 %v1795_v19 }
 0x3d4   :  { %1603 = vmatprep.subr.bf16.mxu1 %v1712_v0 }
 0x3d7   :  { %1605 = vmatpush3.bf16.msra.mxu1 %v1806_v23 }
 0x3d8   :  { %1606 = vmatprep.subr.bf16.mxu1 %v1712_v0 }
 0x3db   :  { %1608 = vmatpush3.bf16.msra.mxu1 %v1813_v26 }
 0x3dc   :  { %1609 = vmatprep.subr.bf16.mxu1 %v1712_v0 }
 0x3df   :  { %1611 = vmatpush3.bf16.msra.mxu1 %v1819_v29 }
 0x495   :  { %v682_v30 = vpop.f32.mrb[4].mxu1 }
 0x496   :  { %v687_v32 = vadd.f32 %v686_v28, %v682_v30  ;;  %v1338_v33 = vpop.f32.mrb[5].mxu1 }
 0x498   :  { %v690_v34 = vadd.f32 %v687_v32, %v212_v31 }
 0x49a   :  { %1653 = vtanh.f32 %v690_v34 }
 0x4a4   :  { %v1654_v35 = vpop.eup %1653 }
 0x4a5   :  { %693 = vst [vmem:[#allocation8 + $0x20] sm:$0xff] %v1654_v35  ;;  %1372 = vmatmul.mubr.f32.vlgmr.msra.gmra.mrb[12].mxu0 %v1654_v35 }
 0x4a6   :  { %1614 = vmatpush3.bf16.msra.mxu0 %v1764_v5  ;;  %1441 = vmatprep.mubr.msk.f32.mxu0 %vm1713_vm0, %v1714_v1  ;;  %v197_v1 = vld [vmem:[%s2018_s1 + $0x28] sm:$0xff] }
 0x4a7   :  { %1615 = vmatprep.subr.bf16.mxu0 %v1712_v0  ;;  %v205_v5 = vmul.f32 0.05, %v197_v1 }
 0x4aa   :  { %1617 = vmatpush3.bf16.msra.mxu0 %v1767_v7  ;;  %v780_v7 = vmul.f32 0.8, %v690_v34 }
 0x4ab   :  { %1618 = vmatprep.subr.bf16.mxu0 %v1712_v0 }
 0x4ae   :  { %1620 = vmatpush3.bf16.msra.mxu0 %v1781_v13 }
 0x4af   :  { %1621 = vmatprep.subr.bf16.mxu0 %v1712_v0 }
 0x4b2   :  { %1623 = vmatpush3.bf16.msra.mxu0 %v1789_v16  ;;  %v213_v16 = vadd.f32 %v1898_v50, %v205_v5 }
 0x4b3   :  { %1624 = vmatprep.subr.bf16.mxu0 %v1712_v0 }
 0x4b6   :  { %1626 = vmatpush3.bf16.msra.mxu0 %v1795_v19 }
 0x4b7   :  { %1627 = vmatprep.subr.bf16.mxu0 %v1712_v0 }
 0x4ba   :  { %1629 = vmatpush3.bf16.msra.mxu0 %v1806_v23 }
 0x4bb   :  { %1630 = vmatprep.subr.bf16.mxu0 %v1712_v0 }
 0x4be   :  { %1632 = vmatpush3.bf16.msra.mxu0 %v1813_v26 }
 0x4bf   :  { %1633 = vmatprep.subr.bf16.mxu0 %v1712_v0  ;;  %v198_v0 = vld [vmem:[%s2018_s1 + $0x30] sm:$0xff] }
 0x4c0   :  { %v206_v26 = vmul.f32 0.05, %v198_v0 }
 0x4c2   :  { %1635 = vmatpush3.bf16.msra.mxu0 %v1819_v29  ;;  %v214_v39 = vadd.f32 %v206_v26, %v1904_v53 }
 0x578   :  { %v776_v13 = vpop.f32.mrb[12].mxu0 }
 0x579   :  { %v781_v19 = vadd.f32 %v780_v7, %v776_v13  ;;  %v1373_v36 = vpop.f32.mrb[13].mxu0 }
 0x57b   :  { %v784_v23 = vadd.f32 %v781_v19, %v213_v16 }
 0x57d   :  { %1655 = vtanh.f32 %v784_v23  ;;  %v874_v29 = vmul.f32 0.8, %v784_v23 }
 0x587   :  { %v1656_v37 = vpop.eup %1655 }
 0x588   :  { %787 = vst [vmem:[#allocation8 + $0x28] sm:$0xff] %v1656_v37  ;;  %1407 = vmatmul.mubr.f32.vlgmr.msra.gmra.mrb[6].mxu1 %v1656_v37 }
 0x65b   :  { %v870_v38 = vpop.f32.mrb[6].mxu1 }
 0x65c   :  { %v875_v40 = vadd.f32 %v874_v29, %v870_v38  ;;  %v1408_v41 = vpop.f32.mrb[7].mxu1 }
 0x65e   :  { %v878_v42 = vadd.f32 %v875_v40, %v214_v39 }
 0x660   :  { %1657 = vtanh.f32 %v878_v42  ;;  %v968_v46 = vmul.f32 0.8, %v878_v42 }
 0x66a   :  { %v1658_v43 = vpop.eup %1657 }
 0x66b   :  { %881 = vst [vmem:[#allocation8 + $0x30] sm:$0xff] %v1658_v43  ;;  %1442 = vmatmul.mubr.f32.vlgmr.msra.gmra.mrb[14].mxu0 %v1658_v43 }
 0x73e   :  { %v964_v47 = vpop.f32.mrb[14].mxu0 }
 0x73f   :  { %v969_v49 = vadd.f32 %v968_v46, %v964_v47  ;;  %v1443_v50 = vpop.f32.mrb[15].mxu0 }
 0x741   :  { %v972_v51 = vadd.f32 %v969_v49, %v215_v48 }
 0x743   :  { %1659 = vtanh.f32 %v972_v51 }
 0x74d   :  { %v1660_v53 = vpop.eup %1659 }
 0x74e   :  { %975 = vst [vmem:[#allocation8 + $0x38] sm:$0xff] %v1660_v53 }
 0x74f   :  { %1694 = shalt.err (!%p1691_p12)
}
 0x750   :  { %s1695_s17 = scalar_lea.hbm %s2022_s5, 1024 }
 0x751   :  { %p1696_p13 = scmp.ne.s32.totalorder %s2022_s5, %s1695_s17  ;;  %p1699_p0 = scmp.lt.u32.totalorder %s1695_s17, %s2022_s5 }
 0x753   :  { %p1701_p1 = pnand %p1699_p0, %p1696_p13 }
 0x755   :  { %1704 = shalt.err (!%p1701_p1)
}
 0x756   :  { %989 = dma.vmem_to_hbm [thread:$0]  %s984_s14, 1024, %s2022_s5, [#allocation7], %s1710_s28, %s1710_s28, %s1711_s29  }
 0x757   :  { %1707 = dma.done.wait [#allocation7], 1024  }
 0x758   :  { %1708 = vsyncadd [#allocation7], 4294966272 }
 0x759   :  { %993 = vsyncpa [#allocation6], 1 }
 0x75a   :  { %994 = vsyncpa [#allocation7], 1 }

</bundles_post_ra>
